<compile_context>
chip_gen: v7x
topology: tpu7x:2x2x1
jax: 0.10.0
libtpu: 0.0.40
codegen_flags: <defaults>
</compile_context>

<pallas_src>
import functools
import math

import jax
import jax.numpy as jnp
from jax.experimental import pallas as pl
from jax.experimental.pallas import tpu as pltpu

LANE = 128
SUBLANE = 8
NEG_INF = -1e30  # finite sentinel for padded logit columns (keep finite, not -inf)


def _round_up(x, m):
    return ((x + m - 1) // m) * m


def _gru_decode_kernel(x_ref, h0_ref, wx_ref, wh_ref, bx_ref, bhn_ref,
                       wo_ref, bo_ref, logp_ref, hout_ref, h_sc, *, hp):
    """One fused GRU step per grid iteration (grid=(T,)); weights stay VMEM-resident.

    x_ref   : (1, Bp, hp)  f32   step input [embedding | categories], lane/sublane padded
    h0_ref  : (Bp, hp)     f32   initial hidden state (padded)
    wx_ref  : (hp, 3*hp)   bf16  input->gate weights  [r | z | i_n]
    wh_ref  : (hp, 3*hp)   bf16  hidden->gate weights [r | z | h_n]
    bx_ref  : (1, 3*hp)    f32   [b_ir+b_hr | b_iz+b_hz | b_in]
    bhn_ref : (1, hp)      f32   b_hn
    wo_ref  : (hp, op)     bf16  output projection (zero-padded rows/cols)
    bo_ref  : (1, op)      f32   output bias, -1e30 in padded columns
    logp_ref: (1, Bp, op)  f32   per-step log-probabilities
    hout_ref: (Bp, hp)     f32   final hidden state
    h_sc    : (Bp, hp)     f32   VMEM scratch: hidden carried across grid steps
    """
    t = pl.program_id(0)

    @pl.when(t == 0)
    def _():
        h_sc[...] = h0_ref[...]

    x = x_ref[0]                  # (Bp, hp) f32
    h = h_sc[...]                 # (Bp, hp) f32

    # Two contiguous lane-dense MXU matmuls (bf16 operands, f32 accumulation).
    gx = jnp.dot(x.astype(jnp.bfloat16), wx_ref[...],
                 preferred_element_type=jnp.float32) + bx_ref[...]      # (Bp, 3*hp)
    gh = jnp.dot(h.astype(jnp.bfloat16), wh_ref[...],
                 preferred_element_type=jnp.float32)                    # (Bp, 3*hp)

    # All slice boundaries are multiples of 128 lanes -> whole-vreg selects.
    rz = jax.nn.sigmoid(gx[:, :2 * hp] + gh[:, :2 * hp])
    r = rz[:, :hp]
    z = rz[:, hp:]
    # PyTorch GRU: n = tanh(W_in x + b_in + r * (W_hn h + b_hn))
    n = jnp.tanh(gx[:, 2 * hp:] + r * (gh[:, 2 * hp:] + bhn_ref[...]))
    h_new = (1.0 - z) * n + z * h            # f32 gate math
    h_sc[...] = h_new

    # Output projection + numerically stable log-softmax over the lane-dense padded slab.
    logits = jnp.dot(h_new.astype(jnp.bfloat16), wo_ref[...],
                     preferred_element_type=jnp.float32) + bo_ref[...]  # (Bp, op)
    m = jnp.max(logits, axis=-1, keepdims=True)
    s = logits - m
    lse = jnp.log(jnp.sum(jnp.exp(s), axis=-1, keepdims=True))
    logp_ref[0] = s - lse

    @pl.when(t == pl.num_programs(0) - 1)
    def _():
        hout_ref[...] = h_new


def gru_decode_pallas(x_seq, h0, wx, wh, bx, bhn, wo, bo, *, hp, op):
    """Run T fused GRU+projection+log-softmax steps inside one pallas_call."""
    T, Bp, _ = x_seq.shape
    const2 = lambda t: (0, 0)

    weight_bytes = (wx.nbytes + wh.nbytes + wo.nbytes
                    + bx.nbytes + bhn.nbytes + bo.nbytes)
    step_bytes = x_seq.nbytes // T + Bp * op * 4
    # Resident weights + double-buffered per-step blocks + hidden buffers + headroom.
    vmem_bytes = int(min(64 << 20,
                         weight_bytes + 4 * step_bytes + 6 * Bp * hp * 4 + (16 << 20)))

    flops = 2 * T * Bp * (2 * hp * 3 * hp + hp * op)
    transcendentals = T * Bp * (3 * hp + op)
    bytes_accessed = weight_bytes + x_seq.nbytes + T * Bp * op * 4 + 2 * Bp * hp * 4

    return pl.pallas_call(
        functools.partial(_gru_decode_kernel, hp=hp),
        grid=(T,),
        in_specs=[
            pl.BlockSpec((1, Bp, hp), lambda t: (t, 0, 0)),   # per-step input
            pl.BlockSpec(h0.shape, const2),                   # initial hidden (DMA once)
            pl.BlockSpec(wx.shape, const2),                   # weights: constant index maps
            pl.BlockSpec(wh.shape, const2),                   #   -> VMEM-resident across T
            pl.BlockSpec(bx.shape, const2),
            pl.BlockSpec(bhn.shape, const2),
            pl.BlockSpec(wo.shape, const2),
            pl.BlockSpec(bo.shape, const2),
        ],
        out_specs=(
            pl.BlockSpec((1, Bp, op), lambda t: (t, 0, 0)),   # per-step log-probs
            pl.BlockSpec((Bp, hp), const2),                   # final hidden (written at t==T-1)
        ),
        out_shape=(
            jax.ShapeDtypeStruct((T, Bp, op), jnp.float32),
            jax.ShapeDtypeStruct((Bp, hp), jnp.float32),
        ),
        scratch_shapes=[pltpu.VMEM((Bp, hp), jnp.float32)],
        compiler_params=pltpu.CompilerParams(
            dimension_semantics=("arbitrary",),               # sequential hidden-state carry
            vmem_limit_bytes=vmem_bytes,
        ),
        cost_estimate=pl.CostEstimate(
            flops=flops, transcendentals=transcendentals, bytes_accessed=bytes_accessed),
    )(x_seq, h0, wx, wh, bx, bhn, wo, bo)


class DecoderRNNPallas:
    """JAX/Pallas port of the PyTorch DecoderRNN (n_layers=1)."""

    def __init__(self, hidden_size, output_size, n_layers=1, batch_size=1,
                 num_categories=5, key=None):
        assert n_layers == 1, "kernel implements the default n_layers=1"
        self.batch_size = batch_size
        hidden_size = hidden_size * 2
        self.hidden_size = hidden_size
        self.embed_size = hidden_size - num_categories
        self.output_size = output_size
        self.num_categories = num_categories

        H, O = hidden_size, output_size
        self.Hp = _round_up(H, LANE)
        self.Op = _round_up(O, LANE)
        Hp, Op = self.Hp, self.Op

        if key is None:
            key = jax.random.PRNGKey(0)
        k_emb, k_wih, k_whh, k_bih, k_bhh, k_wo, k_bo = jax.random.split(key, 7)
        bound = 1.0 / math.sqrt(H)
        u = lambda k, shape: jax.random.uniform(k, shape, jnp.float32, -bound, bound)

        # Synthetic PyTorch-style parameters (nn.Embedding ~ N(0,1), rest uniform).
        self.embedding = jax.random.normal(k_emb, (O, self.embed_size), jnp.float32)
        w_ih_t = u(k_wih, (H, 3 * H))     # transposed weight_ih_l0, gate order r,z,n
        w_hh_t = u(k_whh, (H, 3 * H))     # transposed weight_hh_l0
        b_ih = u(k_bih, (3 * H,))
        b_hh = u(k_bhh, (3 * H,))
        w_out_t = u(k_wo, (H, O))         # transposed Linear weight
        b_out = u(k_bo, (O,))
        self._ref_params = (w_ih_t, w_hh_t, b_ih, b_hh, w_out_t, b_out)  # f32 reference

        # ---- Split (no structural zeros) + 128-lane-padded kernel layouts ----
        wx = jnp.zeros((Hp, 3 * Hp), jnp.float32)   # [r | z | i_n]
        wh = jnp.zeros((Hp, 3 * Hp), jnp.float32)   # [r | z | h_n]
        for g in range(3):
            wx = wx.at[:H, g * Hp:g * Hp + H].set(w_ih_t[:, g * H:(g + 1) * H])
            wh = wh.at[:H, g * Hp:g * Hp + H].set(w_hh_t[:, g * H:(g + 1) * H])
        self.wx = wx.astype(jnp.bfloat16)
        self.wh = wh.astype(jnp.bfloat16)

        bx = jnp.zeros((1, 3 * Hp), jnp.float32)
        bx = bx.at[0, 0 * Hp:0 * Hp + H].set(b_ih[:H] + b_hh[:H])
        bx = bx.at[0, 1 * Hp:1 * Hp + H].set(b_ih[H:2 * H] + b_hh[H:2 * H])
        bx = bx.at[0, 2 * Hp:2 * Hp + H].set(b_ih[2 * H:])
        self.bx = bx
        self.bhn = jnp.zeros((1, Hp), jnp.float32).at[0, :H].set(b_hh[2 * H:])

        self.wo = (jnp.zeros((Hp, Op), jnp.float32).at[:H, :O].set(w_out_t)
                   .astype(jnp.bfloat16))
        self.bo = jnp.full((1, Op), NEG_INF, jnp.float32).at[0, :O].set(b_out)

    def init_hidden(self):
        return jnp.zeros((1, self.batch_size, self.hidden_size), jnp.float32)

    def decode(self, token_seq, hidden, categories):
        """Teacher-forced multi-step decode: the whole time loop runs in one pallas_call.

        token_seq: (T, B) int32 ; hidden: (1, B, H) ; categories: (B, num_categories)
        returns   (logp_seq (T, B, O), hidden (1, B, H))
        """
        T, B = token_seq.shape
        H, Hp, O, Op = self.hidden_size, self.Hp, self.output_size, self.Op
        Bp = _round_up(max(B, SUBLANE), SUBLANE)   # full-sublane stores in the kernel

        # One-time JAX glue for the whole sequence (amortized over T steps).
        emb = self.embedding[token_seq]                                  # (T, B, E)
        cat = jnp.broadcast_to(categories.astype(jnp.float32)[None],
                               (T, B, self.num_categories))
        x = jnp.concatenate([emb, cat], axis=-1)                         # (T, B, H)
        x_p = jnp.pad(x, ((0, 0), (0, Bp - B), (0, Hp - H)))
        h_p = jnp.pad(hidden[0], ((0, Bp - B), (0, Hp - H)))

        logp_p, h_out_p = gru_decode_pallas(x_p, h_p, self.wx, self.wh, self.bx,
                                            self.bhn, self.wo, self.bo,
                                            hp=Hp, op=Op)
        return logp_p[:, :B, :O], h_out_p[:B, :H][None]

    def forward(self, tokens, hidden, categories, batch_size=1):
        # Single GRU step (matches the PyTorch module's forward): T=1 of the fused kernel.
        logp_seq, h_new = self.decode(tokens.reshape(1, batch_size), hidden, categories)
        return logp_seq[0], h_new                                        # ((B,O), (1,B,H))


def decoder_ref(params, embedding, token_seq, hidden, categories):
    """Pure-JAX f32 reference (PyTorch GRU semantics) for correctness checking."""
    w_ih_t, w_hh_t, b_ih, b_hh, w_out_t, b_out = params
    H = hidden.shape[-1]
    h = hidden[0]
    logps = []
    for t in range(token_seq.shape[0]):
        x = jnp.concatenate([embedding[token_seq[t]],
                             categories.astype(jnp.float32)], axis=-1)
        gi = x @ w_ih_t + b_ih
        gh = h @ w_hh_t + b_hh
        r = jax.nn.sigmoid(gi[:, :H] + gh[:, :H])
        z = jax.nn.sigmoid(gi[:, H:2 * H] + gh[:, H:2 * H])
        n = jnp.tanh(gi[:, 2 * H:] + r * gh[:, 2 * H:])
        h = (1.0 - z) * n + z * h
        logits = h @ w_out_t + b_out
        logps.append(jax.nn.log_softmax(logits, axis=-1))
    return jnp.stack(logps), h[None]


if __name__ == "__main__":
    key = jax.random.PRNGKey(0)
    k_param, k_tok, k_cat = jax.random.split(key, 3)

    hidden_size = 16          # module doubles it internally -> H = 32
    output_size = 32
    num_categories = 5
    batch = 2
    T = 6

    model = DecoderRNNPallas(hidden_size, output_size, n_layers=1,
                             batch_size=batch, num_categories=num_categories,
                             key=k_param)

    tokens = jax.random.randint(k_tok, (batch,), 0, output_size, dtype=jnp.int32)
    categories = jax.random.uniform(k_cat, (batch, num_categories), jnp.float32)
    hidden = model.init_hidden()

    # ---- Single-step forward() (module semantics) ----
    logp, h_new = model.forward(tokens, hidden, categories, batch_size=batch)
    jax.block_until_ready((logp, h_new))
    assert logp.shape == (batch, output_size)
    assert h_new.shape == (1, batch, model.hidden_size)

    logp_ref1, h_ref1 = decoder_ref(model._ref_params, model.embedding,
                                    tokens.reshape(1, batch), hidden, categories)
    assert jnp.allclose(jnp.sum(jnp.exp(logp), axis=-1), 1.0, atol=1e-3)
    assert jnp.allclose(logp, logp_ref1[0], atol=5e-2)     # bf16 matmul operands -> loose tol
    assert jnp.allclose(h_new, h_ref1, atol=5e-2)
    assert jnp.all(jnp.isfinite(logp)) and jnp.all(jnp.isfinite(h_new))

    # ---- Fused multi-step decode: whole time loop inside one pallas_call ----
    token_seq = jax.random.randint(k_tok, (T, batch), 0, output_size, dtype=jnp.int32)
    logp_seq, h_T = model.decode(token_seq, hidden, categories)
    jax.block_until_ready((logp_seq, h_T))
    logp_seq_ref, h_T_ref = decoder_ref(model._ref_params, model.embedding,
                                        token_seq, hidden, categories)
    assert logp_seq.shape == (T, batch, output_size)
    assert h_T.shape == (1, batch, model.hidden_size)
    assert jnp.allclose(jnp.sum(jnp.exp(logp_seq), axis=-1), 1.0, atol=1e-3)
    assert jnp.allclose(logp_seq, logp_seq_ref, atol=5e-2)
    assert jnp.allclose(h_T, h_T_ref, atol=5e-2)
    assert jnp.all(jnp.isfinite(logp_seq)) and jnp.all(jnp.isfinite(h_T))

    print("KERNEL_OK")
</pallas_src>

<mosaic_0001>
module attributes {stable_mosaic.version = 11 : i64} {
  func.func @_gru_decode_kernel(%arg0: i32, %arg1: memref<1x8x128xf32, #tpu.memory_space<vmem>>, %arg2: memref<8x128xf32, #tpu.memory_space<vmem>>, %arg3: memref<128x384xbf16, #tpu.memory_space<vmem>>, %arg4: memref<128x384xbf16, #tpu.memory_space<vmem>>, %arg5: memref<1x384xf32, #tpu.memory_space<vmem>>, %arg6: memref<1x128xf32, #tpu.memory_space<vmem>>, %arg7: memref<128x128xbf16, #tpu.memory_space<vmem>>, %arg8: memref<1x128xf32, #tpu.memory_space<vmem>>, %arg9: memref<1x8x128xf32, #tpu.memory_space<vmem>>, %arg10: memref<8x128xf32, #tpu.memory_space<vmem>>, %arg11: memref<8x128xf32, #tpu.memory_space<vmem>>) attributes {dimension_semantics = [#tpu.dimension_semantics<arbitrary>], iteration_bounds = array<i64: 1>, scalar_prefetch = 0 : i64, scratch_operands = 1 : i64, tpu.core_type = #tpu.core_type<tc>, window_params = [{transform_indices = @transform_0, window_bounds = array<i64: 1, 8, 128>}, {pipeline_mode = #tpu.pipeline_mode<synchronous>, transform_indices = @transform_1, window_bounds = array<i64: 8, 128>}, {pipeline_mode = #tpu.pipeline_mode<synchronous>, transform_indices = @transform_2, window_bounds = array<i64: 128, 384>}, {pipeline_mode = #tpu.pipeline_mode<synchronous>, transform_indices = @transform_3, window_bounds = array<i64: 128, 384>}, {pipeline_mode = #tpu.pipeline_mode<synchronous>, transform_indices = @transform_4, window_bounds = array<i64: 1, 384>}, {pipeline_mode = #tpu.pipeline_mode<synchronous>, transform_indices = @transform_5, window_bounds = array<i64: 1, 128>}, {pipeline_mode = #tpu.pipeline_mode<synchronous>, transform_indices = @transform_6, window_bounds = array<i64: 128, 128>}, {pipeline_mode = #tpu.pipeline_mode<synchronous>, transform_indices = @transform_7, window_bounds = array<i64: 1, 128>}, {transform_indices = @transform_8, window_bounds = array<i64: 1, 8, 128>}, {pipeline_mode = #tpu.pipeline_mode<synchronous>, transform_indices = @transform_9, window_bounds = array<i64: 8, 128>}]} {
    %c0_i32 = arith.constant 0 : i32
    %0 = arith.cmpi eq, %arg0, %c0_i32 : i32
    %1 = arith.extui %0 : i1 to i32
    %c0_i32_0 = arith.constant 0 : i32
    %2 = arith.cmpi ne, %1, %c0_i32_0 : i32
    scf.if %2 {
      %c0_30 = arith.constant 0 : index
      %c0_31 = arith.constant 0 : index
      %61 = vector.load %arg2[%c0_30, %c0_31] : memref<8x128xf32, #tpu.memory_space<vmem>>, vector<8x128xf32>
      %c0_32 = arith.constant 0 : index
      %c0_33 = arith.constant 0 : index
      %62 = vector.load %arg11[%c0_32, %c0_33] : memref<8x128xf32, #tpu.memory_space<vmem>>, vector<8x128xf32>
      tpu.vector_store %arg11[%c0_32, %c0_33], %61 {strides = array<i32>} : memref<8x128xf32, #tpu.memory_space<vmem>>, vector<8x128xf32>,
    } else {
    }
    %c0 = arith.constant 0 : index
    %c0_1 = arith.constant 0 : index
    %c0_2 = arith.constant 0 : index
    %3 = vector.load %arg1[%c0, %c0_1, %c0_2] : memref<1x8x128xf32, #tpu.memory_space<vmem>>, vector<1x8x128xf32>
    %4 = vector.shape_cast %3 : vector<1x8x128xf32> to vector<8x128xf32>
    %c0_3 = arith.constant 0 : index
    %c0_4 = arith.constant 0 : index
    %5 = vector.load %arg11[%c0_3, %c0_4] : memref<8x128xf32, #tpu.memory_space<vmem>>, vector<8x128xf32>
    %6 = arith.truncf %4 : vector<8x128xf32> to vector<8x128xbf16>
    %c0_5 = arith.constant 0 : index
    %c0_6 = arith.constant 0 : index
    %7 = vector.load %arg3[%c0_5, %c0_6] : memref<128x384xbf16, #tpu.memory_space<vmem>>, vector<128x384xbf16>
    %cst = arith.constant dense<0.000000e+00> : vector<8x384xf32>
    %8 = tpu.matmul %6, %7, %cst {dimension_numbers = #tpu.dot_dimension_numbers<[1], [0], [0], [1], [0, 0, 1, 1], [], []>} : vector<8x128xbf16>, vector<128x384xbf16>, vector<8x384xf32> -> vector<8x384xf32>
    %c0_7 = arith.constant 0 : index
    %c0_8 = arith.constant 0 : index
    %9 = vector.load %arg5[%c0_7, %c0_8] : memref<1x384xf32, #tpu.memory_space<vmem>>, vector<1x384xf32>
    %10 = vector.broadcast %9 : vector<1x384xf32> to vector<8x384xf32>
    %11 = arith.addf %8, %10 : vector<8x384xf32>
    %12 = arith.truncf %5 : vector<8x128xf32> to vector<8x128xbf16>
    %c0_9 = arith.constant 0 : index
    %c0_10 = arith.constant 0 : index
    %13 = vector.load %arg4[%c0_9, %c0_10] : memref<128x384xbf16, #tpu.memory_space<vmem>>, vector<128x384xbf16>
    %cst_11 = arith.constant dense<0.000000e+00> : vector<8x384xf32>
    %14 = tpu.matmul %12, %13, %cst_11 {dimension_numbers = #tpu.dot_dimension_numbers<[1], [0], [0], [1], [0, 0, 1, 1], [], []>} : vector<8x128xbf16>, vector<128x384xbf16>, vector<8x384xf32> -> vector<8x384xf32>
    %15 = vector.extract_strided_slice %11 {offsets = [0, 0], sizes = [8, 256], strides = [1, 1]} : vector<8x384xf32> to vector<8x256xf32>
    %16 = vector.extract_strided_slice %14 {offsets = [0, 0], sizes = [8, 256], strides = [1, 1]} : vector<8x384xf32> to vector<8x256xf32>
    %17 = arith.addf %15, %16 : vector<8x256xf32>
    %18 = arith.negf %17 : vector<8x256xf32>
    %19 = math.exp %18 : vector<8x256xf32>
    %cst_12 = arith.constant 1.000000e+00 : f32
    %20 = vector.broadcast %cst_12 : f32 to vector<8x256xf32>
    %21 = arith.addf %20, %19 : vector<8x256xf32>
    %22 = arith.divf %20, %21 : vector<8x256xf32>
    %23 = vector.extract_strided_slice %22 {offsets = [0, 0], sizes = [8, 128], strides = [1, 1]} : vector<8x256xf32> to vector<8x128xf32>
    %24 = vector.extract_strided_slice %22 {offsets = [0, 128], sizes = [8, 128], strides = [1, 1]} : vector<8x256xf32> to vector<8x128xf32>
    %25 = vector.extract_strided_slice %11 {offsets = [0, 256], sizes = [8, 128], strides = [1, 1]} : vector<8x384xf32> to vector<8x128xf32>
    %26 = vector.extract_strided_slice %14 {offsets = [0, 256], sizes = [8, 128], strides = [1, 1]} : vector<8x384xf32> to vector<8x128xf32>
    %c0_13 = arith.constant 0 : index
    %c0_14 = arith.constant 0 : index
    %27 = vector.load %arg6[%c0_13, %c0_14] : memref<1x128xf32, #tpu.memory_space<vmem>>, vector<1x128xf32>
    %28 = vector.broadcast %27 : vector<1x128xf32> to vector<8x128xf32>
    %29 = arith.addf %26, %28 : vector<8x128xf32>
    %30 = arith.mulf %23, %29 : vector<8x128xf32>
    %31 = arith.addf %25, %30 : vector<8x128xf32>
    %32 = math.tanh %31 : vector<8x128xf32>
    %cst_15 = arith.constant 1.000000e+00 : f32
    %33 = vector.broadcast %cst_15 : f32 to vector<8x128xf32>
    %34 = arith.subf %33, %24 : vector<8x128xf32>
    %35 = arith.mulf %34, %32 : vector<8x128xf32>
    %36 = arith.mulf %24, %5 : vector<8x128xf32>
    %37 = arith.addf %35, %36 : vector<8x128xf32>
    %c0_16 = arith.constant 0 : index
    %c0_17 = arith.constant 0 : index
    %38 = vector.load %arg11[%c0_16, %c0_17] : memref<8x128xf32, #tpu.memory_space<vmem>>, vector<8x128xf32>
    tpu.vector_store %arg11[%c0_16, %c0_17], %37 {strides = array<i32>} : memref<8x128xf32, #tpu.memory_space<vmem>>, vector<8x128xf32>,
    %39 = arith.truncf %37 : vector<8x128xf32> to vector<8x128xbf16>
    %c0_18 = arith.constant 0 : index
    %c0_19 = arith.constant 0 : index
    %40 = vector.load %arg7[%c0_18, %c0_19] : memref<128x128xbf16, #tpu.memory_space<vmem>>, vector<128x128xbf16>
    %cst_20 = arith.constant dense<0.000000e+00> : vector<8x128xf32>
    %41 = tpu.matmul %39, %40, %cst_20 {dimension_numbers = #tpu.dot_dimension_numbers<[1], [0], [0], [1], [0, 0, 1, 1], [], []>} : vector<8x128xbf16>, vector<128x128xbf16>, vector<8x128xf32> -> vector<8x128xf32>
    %c0_21 = arith.constant 0 : index
    %c0_22 = arith.constant 0 : index
    %42 = vector.load %arg8[%c0_21, %c0_22] : memref<1x128xf32, #tpu.memory_space<vmem>>, vector<1x128xf32>
    %43 = vector.broadcast %42 : vector<1x128xf32> to vector<8x128xf32>
    %44 = arith.addf %41, %43 : vector<8x128xf32>
    %cst_23 = arith.constant dense<0xFF800000> : vector<8xf32>
    %45 = vector.multi_reduction <maximumf>, %44, %cst_23 [1] : vector<8x128xf32> to vector<8xf32>
    %46 = vector.shape_cast %45 : vector<8xf32> to vector<8x1xf32>
    %47 = vector.broadcast %46 : vector<8x1xf32> to vector<8x128xf32>
    %48 = arith.subf %44, %47 : vector<8x128xf32>
    %49 = math.exp %48 : vector<8x128xf32>
    %cst_24 = arith.constant dense<0.000000e+00> : vector<8xf32>
    %50 = vector.multi_reduction <add>, %49, %cst_24 [1] : vector<8x128xf32> to vector<8xf32>
    %51 = vector.shape_cast %50 : vector<8xf32> to vector<8x1xf32>
    %52 = math.log %51 : vector<8x1xf32>
    %53 = vector.broadcast %52 : vector<8x1xf32> to vector<8x128xf32>
    %54 = arith.subf %48, %53 : vector<8x128xf32>
    %c0_25 = arith.constant 0 : index
    %c0_26 = arith.constant 0 : index
    %c0_27 = arith.constant 0 : index
    %55 = vector.load %arg9[%c0_25, %c0_26, %c0_27] : memref<1x8x128xf32, #tpu.memory_space<vmem>>, vector<1x8x128xf32>
    %56 = vector.shape_cast %55 : vector<1x8x128xf32> to vector<8x128xf32>
    %57 = vector.shape_cast %54 : vector<8x128xf32> to vector<1x8x128xf32>
    tpu.vector_store %arg9[%c0_25, %c0_26, %c0_27], %57 {strides = array<i32>} : memref<1x8x128xf32, #tpu.memory_space<vmem>>, vector<1x8x128xf32>,
    %c0_i32_28 = arith.constant 0 : i32
    %58 = arith.cmpi eq, %arg0, %c0_i32_28 : i32
    %59 = arith.extui %58 : i1 to i32
    %c0_i32_29 = arith.constant 0 : i32
    %60 = arith.cmpi ne, %59, %c0_i32_29 : i32
    scf.if %60 {
      %c0_30 = arith.constant 0 : index
      %c0_31 = arith.constant 0 : index
      %61 = vector.load %arg10[%c0_30, %c0_31] : memref<8x128xf32, #tpu.memory_space<vmem>>, vector<8x128xf32>
      tpu.vector_store %arg10[%c0_30, %c0_31], %37 {strides = array<i32>} : memref<8x128xf32, #tpu.memory_space<vmem>>, vector<8x128xf32>,
    } else {
    }
    return
  }
  func.func @transform_0(%arg0: i32) -> (i32, i32, i32) {
    %c0_i32 = arith.constant 0 : i32
    %c0_i32_0 = arith.constant 0 : i32
    %c0_i32_1 = arith.constant 0 : i32
    return %arg0, %c0_i32, %c0_i32_0 : i32, i32, i32
  }
  func.func @transform_1(%arg0: i32) -> (i32, i32) {
    %c0_i32 = arith.constant 0 : i32
    %c0_i32_0 = arith.constant 0 : i32
    %c0_i32_1 = arith.constant 0 : i32
    return %c0_i32, %c0_i32_0 : i32, i32
  }
  func.func @transform_2(%arg0: i32) -> (i32, i32) {
    %c0_i32 = arith.constant 0 : i32
    %c0_i32_0 = arith.constant 0 : i32
    %c0_i32_1 = arith.constant 0 : i32
    return %c0_i32, %c0_i32_0 : i32, i32
  }
  func.func @transform_3(%arg0: i32) -> (i32, i32) {
    %c0_i32 = arith.constant 0 : i32
    %c0_i32_0 = arith.constant 0 : i32
    %c0_i32_1 = arith.constant 0 : i32
    return %c0_i32, %c0_i32_0 : i32, i32
  }
  func.func @transform_4(%arg0: i32) -> (i32, i32) {
    %c0_i32 = arith.constant 0 : i32
    %c0_i32_0 = arith.constant 0 : i32
    %c0_i32_1 = arith.constant 0 : i32
    return %c0_i32, %c0_i32_0 : i32, i32
  }
  func.func @transform_5(%arg0: i32) -> (i32, i32) {
    %c0_i32 = arith.constant 0 : i32
    %c0_i32_0 = arith.constant 0 : i32
    %c0_i32_1 = arith.constant 0 : i32
    return %c0_i32, %c0_i32_0 : i32, i32
  }
  func.func @transform_6(%arg0: i32) -> (i32, i32) {
    %c0_i32 = arith.constant 0 : i32
    %c0_i32_0 = arith.constant 0 : i32
    %c0_i32_1 = arith.constant 0 : i32
    return %c0_i32, %c0_i32_0 : i32, i32
  }
  func.func @transform_7(%arg0: i32) -> (i32, i32) {
    %c0_i32 = arith.constant 0 : i32
    %c0_i32_0 = arith.constant 0 : i32
    %c0_i32_1 = arith.constant 0 : i32
    return %c0_i32, %c0_i32_0 : i32, i32
  }
  func.func @transform_8(%arg0: i32) -> (i32, i32, i32) {
    %c0_i32 = arith.constant 0 : i32
    %c0_i32_0 = arith.constant 0 : i32
    %c0_i32_1 = arith.constant 0 : i32
    return %arg0, %c0_i32, %c0_i32_0 : i32, i32, i32
  }
  func.func @transform_9(%arg0: i32) -> (i32, i32) {
    %c0_i32 = arith.constant 0 : i32
    %c0_i32_0 = arith.constant 0 : i32
    %c0_i32_1 = arith.constant 0 : i32
    return %c0_i32, %c0_i32_0 : i32, i32
  }
}

</mosaic_0001>

<bundles_post_ra>
// kernel: tpu_custom_call.1
= control target key start
LH: loop header
LB: loop body
LE: loop exit
PB: predicated region body
PF: predicated region fallthrough
CT: control target
= control target key end

     0   :  { %15 = vsyncpa [#allocation4], 0  ;;  %s1412_s0 = inlined_call_operand.hbm [shape: f32[1,8,128], index: 0, kind: input, shape index: {}]   ;;  %s1413_s1 = inlined_call_operand.hbm [shape: f32[8,128], index: 1, kind: input, shape index: {}]   ;;  %s1414_s2 = inlined_call_operand.hbm [shape: bf16[128,384], index: 2, kind: input, shape index: {}]   ;;  %s1415_s3 = inlined_call_operand.hbm [shape: bf16[128,384], index: 3, kind: input, shape index: {}]   ;;  %s1416_s4 = inlined_call_operand.vmem [shape: f32[1,384], index: 4, kind: input, shape index: {}]   ;;  %s1417_s5 = inlined_call_operand.vmem [shape: f32[1,128], index: 5, kind: input, shape index: {}]   ;;  %s1418_s6 = inlined_call_operand.hbm [shape: bf16[128,128], index: 6, kind: input, shape index: {}]   ;;  %s1419_s7 = inlined_call_operand.vmem [shape: f32[1,128], index: 7, kind: input, shape index: {}]   ;;  %s1420_s8 = inlined_call_operand.hbm [shape: f32[1,8,128], index: 8, kind: output, shape index: {0}]   ;;  %s1421_s9 = inlined_call_operand.hbm [shape: f32[8,128], index: 9, kind: output, shape index: {1}]  }
   0x1   :  { %16 = vsyncpa [#allocation7], 0 }
   0x2   :  { %17 = vsyncpa [#allocation10], 0 }
   0x3   :  { %18 = vsyncpa [#allocation5], 0 }
   0x4   :  { %19 = vsyncpa [#allocation14], 0  ;;  %s1212_s30 = smov [#allocation6]   ;;  %s1048_s13 = scalar_lea.hbm %s1413_s1, 128 }
   0x5   :  { %s36_s10 = sshll.u32 %s1212_s30, 4  ;;  %p1049_p0 = scmp.ne.s32.totalorder %s1413_s1, %s1048_s13  ;;  %s37_s10 = int_to_ptr.vmem [resolvable:$true] %s36_s10 }
   0x6   :  { %p1052_p1 = scmp.lt.u32.totalorder %s1048_s13, %s1413_s1 }
   0x8   :  { %p1054_p2 = pnand %p1052_p1, %p1049_p0 }
   0xa   :  { %1057 = shalt.err (!%p1054_p2)
}
   0xb   :  { %s1058_s18 = scalar_lea.vmem %s37_s10, 128  ;;  %p1063_p4 = scmp.lt.s32.totalorder %s37_s10, %s37_s10 }
   0xc   :  { %p1059_p3 = scmp.ne.s32.totalorder %s37_s10, %s1058_s18  ;;  %p1064_p5 = scmp.lt.s32.totalorder %s1058_s18, %s1058_s18 }
   0xe   :  { %p1065_p6 = por %p1064_p5, %p1063_p4 }
  0x10   :  { %p1066_p7 = pnand %p1065_p6, %p1059_p3 }
  0x12   :  { %1069 = shalt.err (!%p1066_p7)
}
  0x13   :  { %39 = dma.hbm_to_vmem [thread:$0]  %s1413_s1, 128, %s37_s10, [#allocation7]  }
  0x14   :  { %s1213_s21 = smov [#allocation9]   ;;  %s1214_s23 = smov [#allocation3]  }
  0x15   :  { %s57_s22 = sshll.u32 %s1213_s21, 4  ;;  %s26_s24 = sshll.u32 %s1214_s23, 4  ;;  %s58_s22 = int_to_ptr.vmem [resolvable:$true] %s57_s22  ;;  %s27_s24 = int_to_ptr.vmem [resolvable:$true] %s26_s24 }
  0x16   :  { %s1070_s27 = scalar_lea.hbm %s1415_s3, 3072 }
  0x17   :  { %p1071_p8 = scmp.ne.s32.totalorder %s1415_s3, %s1070_s27  ;;  %p1074_p9 = scmp.lt.u32.totalorder %s1070_s27, %s1415_s3 }
  0x19   :  { %p1076_p10 = pnand %p1074_p9, %p1071_p8 }
  0x1b   :  { %1079 = shalt.err (!%p1076_p10)
}
  0x1c   :  { %s1080_s1 = scalar_lea.vmem %s58_s22, 3072  ;;  %p1085_p12 = scmp.lt.s32.totalorder %s58_s22, %s58_s22 }
  0x1d   :  { %p1081_p11 = scmp.ne.s32.totalorder %s58_s22, %s1080_s1  ;;  %p1086_p13 = scmp.lt.s32.totalorder %s1080_s1, %s1080_s1 }
  0x1f   :  { %p1087_p0 = por %p1086_p13, %p1085_p12 }
  0x21   :  { %p1088_p1 = pnand %p1087_p0, %p1081_p11 }
  0x23   :  { %1091 = shalt.err (!%p1088_p1)
}
  0x24   :  { %s1215_s10 = smov 192   ;;  %s1216_s12 = smov 12  }
  0x25   :  { %63 = dma.hbm_to_vmem [thread:$0]  %s1415_s3, 3072, %s58_s22, [#allocation10], %s1215_s10, %s1215_s10, %s1216_s12  }
  0x26   :  { %s1092_s17 = scalar_lea.hbm %s1412_s0, 128 }
  0x27   :  { %p1093_p2 = scmp.ne.s32.totalorder %s1412_s0, %s1092_s17  ;;  %p1096_p3 = scmp.lt.u32.totalorder %s1092_s17, %s1412_s0 }
  0x29   :  { %p1098_p4 = pnand %p1096_p3, %p1093_p2 }
  0x2b   :  { %1101 = shalt.err (!%p1098_p4)
}
  0x2c   :  { %s1102_s23 = scalar_lea.vmem %s27_s24, 128  ;;  %p1107_p6 = scmp.lt.s32.totalorder %s27_s24, %s27_s24 }
  0x2d   :  { %p1103_p5 = scmp.ne.s32.totalorder %s27_s24, %s1102_s23  ;;  %p1108_p7 = scmp.lt.s32.totalorder %s1102_s23, %s1102_s23 }
  0x2f   :  { %p1109_p8 = por %p1108_p7, %p1107_p6 }
  0x31   :  { %p1110_p9 = pnand %p1109_p8, %p1103_p5 }
  0x33   :  { %1113 = shalt.err (!%p1110_p9)
}
  0x34   :  { %29 = dma.hbm_to_vmem [thread:$0]  %s1412_s0, 128, %s27_s24, [#allocation4]  }
  0x35   :  { %s1217_s25 = smov [#allocation8]   ;;  %s1218_s27 = smov [#allocation11]  }
  0x36   :  { %s45_s26 = sshll.u32 %s1217_s25, 4  ;;  %s73_s28 = sshll.u32 %s1218_s27, 4  ;;  %s46_s26 = int_to_ptr.vmem [resolvable:$true] %s45_s26  ;;  %s74_s28 = int_to_ptr.vmem [resolvable:$true] %s73_s28 }
  0x37   :  { %s1114_s11 = scalar_lea.hbm %s1414_s2, 3072 }
  0x38   :  { %p1115_p10 = scmp.ne.s32.totalorder %s1414_s2, %s1114_s11  ;;  %p1118_p11 = scmp.lt.u32.totalorder %s1114_s11, %s1414_s2 }
  0x3a   :  { %p1120_p12 = pnand %p1118_p11, %p1115_p10 }
  0x3c   :  { %1123 = shalt.err (!%p1120_p12)
}
  0x3d   :  { %s1124_s0 = scalar_lea.vmem %s46_s26, 3072  ;;  %p1129_p0 = scmp.lt.s32.totalorder %s46_s26, %s46_s26 }
  0x3e   :  { %p1125_p13 = scmp.ne.s32.totalorder %s46_s26, %s1124_s0  ;;  %p1130_p1 = scmp.lt.s32.totalorder %s1124_s0, %s1124_s0 }
  0x40   :  { %p1131_p2 = por %p1130_p1, %p1129_p0 }
  0x42   :  { %p1132_p3 = pnand %p1131_p2, %p1125_p13 }
  0x44   :  { %1135 = shalt.err (!%p1132_p3)
}
  0x45   :  { %51 = dma.hbm_to_vmem [thread:$0]  %s1414_s2, 3072, %s46_s26, [#allocation7], %s1215_s10, %s1215_s10, %s1216_s12  }
  0x46   :  { %s1136_s19 = scalar_lea.hbm %s1418_s6, 1024 }
  0x47   :  { %p1137_p4 = scmp.ne.s32.totalorder %s1418_s6, %s1136_s19  ;;  %p1140_p5 = scmp.lt.u32.totalorder %s1136_s19, %s1418_s6 }
  0x49   :  { %p1142_p6 = pnand %p1140_p5, %p1137_p4 }
  0x4b   :  { %1145 = shalt.err (!%p1142_p6)
}
  0x4c   :  { %s1146_s22 = scalar_lea.vmem %s74_s28, 1024  ;;  %p1151_p8 = scmp.lt.s32.totalorder %s74_s28, %s74_s28 }
  0x4d   :  { %p1147_p7 = scmp.ne.s32.totalorder %s74_s28, %s1146_s22  ;;  %p1152_p9 = scmp.lt.s32.totalorder %s1146_s22, %s1146_s22 }
  0x4f   :  { %p1153_p10 = por %p1152_p9, %p1151_p8 }
  0x51   :  { %p1154_p11 = pnand %p1153_p10, %p1147_p7 }
  0x53   :  { %1157 = shalt.err (!%p1154_p11)
}
  0x54   :  { %s1219_s2 = smov 64   ;;  %s1220_s10 = smov 4  }
  0x55   :  { %79 = dma.hbm_to_vmem [thread:$0]  %s1418_s6, 1024, %s74_s28, [#allocation10], %s1219_s2, %s1219_s2, %s1220_s10  }
  0x56   :  { %1202 = dma.done.wait [#allocation4], 128  }
  0x57   :  { %1203 = vsyncadd [#allocation4], 4294967168 }
  0x58   :  { %1204 = dma.done.wait [#allocation7], 3200  }
  0x59   :  { %1205 = vsyncadd [#allocation7], 4294964096 }
  0x5a   :  { %1206 = dma.done.wait [#allocation10], 4096  }
  0x5b   :  { %1207 = vsyncadd [#allocation10], 4294963200  ;;  %v1221_v0 = vmov 0.0   ;;  %v1222_v1 = vmov 0   ;;  %vm1223_vm0 = vmmov 0   ;;  %v104_v23 = vld [vmem:[#allocation3] sm:$0xff] }
  0x5c   :  { %882 = vmatprep.subr.bf16.mxu1 %v1221_v0  ;;  %316 = vmatprep.mubr.bf16.mxu0 %v1222_v1  ;;  %v962_v2 = vld [vmem:[#allocation8 + $0x4] ss:$12 sps:$4 sm:$0xff]   ;;  %v964_v3 = vld [vmem:[#allocation8] ss:$12 sps:$4 sm:$0xff]   ;;  %v965_v4 = vld [vmem:[#allocation8 + $0x1c] ss:$12 sps:$4 sm:$0xff]   ;;  %v106_v26 = vpack.c.bf16 %v104_v23, %v104_v23 }
  0x5d   :  { %898 = vmatprep.mubr.msk.bf16.mxu1 %vm1223_vm0, %v1221_v0  ;;  %284 = vmatprep.subr.bf16.mxu0 %v962_v2  ;;  %v967_v5 = vld [vmem:[#allocation8 + $0x18] ss:$12 sps:$4 sm:$0xff]   ;;  %v968_v6 = vld [vmem:[#allocation8 + $0x34] ss:$12 sps:$4 sm:$0xff]   ;;  %v970_v7 = vld [vmem:[#allocation8 + $0x30] ss:$12 sps:$4 sm:$0xff]  }
  0x5e   :  { %285 = vmatpush1.bf16.msra.mxu0 %v964_v3  ;;  %v971_v8 = vld [vmem:[#allocation8 + $0x4c] ss:$12 sps:$4 sm:$0xff]   ;;  %v982_v9 = vld [vmem:[#allocation8 + $0x8] ss:$12 sps:$4 sm:$0xff]   ;;  %v974_v11 = vld [vmem:[#allocation8 + $0x64] ss:$12 sps:$4 sm:$0xff]   ;;  %v141_v3 = vlaneseq }
  0x5f   :  { %286 = vmatprep.subr.bf16.mxu0 %v965_v4  ;;  %v973_v10 = vld [vmem:[#allocation8 + $0x48] ss:$12 sps:$4 sm:$0xff]   ;;  %883 = vmatpush3.bf16.msra.mxu1 %v982_v9  ;;  %v986_v12 = vld [vmem:[#allocation8 + $0x20] ss:$12 sps:$4 sm:$0xff]   ;;  %v988_v14 = vld [vmem:[#allocation8 + $0x38] ss:$12 sps:$4 sm:$0xff]  }
  0x60   :  { %884 = vmatprep.subr.bf16.mxu1 %v1221_v0  ;;  %v976_v13 = vld [vmem:[#allocation8 + $0x60] ss:$12 sps:$4 sm:$0xff]   ;;  %v977_v15 = vld [vmem:[#allocation8 + $0x7c] ss:$12 sps:$4 sm:$0xff]   ;;  %v979_v16 = vld [vmem:[#allocation8 + $0x78] ss:$12 sps:$4 sm:$0xff]  }
  0x61   :  { %v992_v17 = vld [vmem:[#allocation8 + $0x50] ss:$12 sps:$4 sm:$0xff]   ;;  %v980_v18 = vld [vmem:[#allocation8 + $0x94] ss:$12 sps:$4 sm:$0xff]   ;;  %v984_v21 = vld [vmem:[#allocation8 + $0xac] ss:$12 sps:$4 sm:$0xff]  }
  0x62   :  { %287 = vmatpush1.bf16.msra.mxu0 %v967_v5  ;;  %v983_v19 = vld [vmem:[#allocation8 + $0x90] ss:$12 sps:$4 sm:$0xff]   ;;  %v996_v20 = vld [vmem:[#allocation8 + $0x68] ss:$12 sps:$4 sm:$0xff]   ;;  %v1000_v24 = vld [vmem:[#allocation8 + $0x80] ss:$12 sps:$4 sm:$0xff]  }
  0x63   :  { %288 = vmatprep.subr.bf16.mxu0 %v968_v6  ;;  %885 = vmatpush3.bf16.msra.mxu1 %v986_v12  ;;  %v987_v22 = vld [vmem:[#allocation8 + $0xa8] ss:$12 sps:$4 sm:$0xff]   ;;  %v991_v25 = vld [vmem:[#allocation9 + $0x4] ss:$12 sps:$4 sm:$0xff]   ;;  %v989_v27 = vld [vmem:[#allocation9] ss:$12 sps:$4 sm:$0xff]  }
  0x64   :  { %886 = vmatprep.subr.bf16.mxu1 %v1221_v0  ;;  %v1004_v28 = vld [vmem:[#allocation8 + $0x98] ss:$12 sps:$4 sm:$0xff]   ;;  %v995_v29 = vld [vmem:[#allocation9 + $0x1c] ss:$12 sps:$4 sm:$0xff]   ;;  %v999_v32 = vld [vmem:[#allocation9 + $0x34] ss:$12 sps:$4 sm:$0xff]  }
  0x65   :  { %v993_v30 = vld [vmem:[#allocation9 + $0x18] ss:$12 sps:$4 sm:$0xff]   ;;  %v1008_v31 = vld [vmem:[#allocation8 + $0xb0] ss:$12 sps:$4 sm:$0xff]   ;;  %v1015_v35 = vld [vmem:[#allocation9 + $0x8] ss:$12 sps:$4 sm:$0xff]  }
  0x66   :  { %289 = vmatpush1.bf16.msra.mxu0 %v970_v7  ;;  %v997_v33 = vld [vmem:[#allocation9 + $0x30] ss:$12 sps:$4 sm:$0xff]   ;;  %v1003_v34 = vld [vmem:[#allocation9 + $0x4c] ss:$12 sps:$4 sm:$0xff]   ;;  %v1001_v36 = vld [vmem:[#allocation9 + $0x48] ss:$12 sps:$4 sm:$0xff]  }
  0x67   :  { %290 = vmatprep.subr.bf16.mxu0 %v971_v8  ;;  %887 = vmatpush3.bf16.msra.mxu1 %v988_v14  ;;  %v1019_v37 = vld [vmem:[#allocation9 + $0x20] ss:$12 sps:$4 sm:$0xff]   ;;  %v1007_v38 = vld [vmem:[#allocation9 + $0x64] ss:$12 sps:$4 sm:$0xff]   ;;  %v1011_v41 = vld [vmem:[#allocation9 + $0x7c] ss:$12 sps:$4 sm:$0xff]  }
  0x68   :  { %888 = vmatprep.subr.bf16.mxu1 %v1221_v0  ;;  %v1005_v39 = vld [vmem:[#allocation9 + $0x60] ss:$12 sps:$4 sm:$0xff]   ;;  %v1020_v40 = vld [vmem:[#allocation9 + $0x38] ss:$12 sps:$4 sm:$0xff]   ;;  %v1021_v43 = vld [vmem:[#allocation9 + $0x50] ss:$12 sps:$4 sm:$0xff]  }
  0x69   :  { %v1009_v42 = vld [vmem:[#allocation9 + $0x78] ss:$12 sps:$4 sm:$0xff]   ;;  %v1014_v44 = vld [vmem:[#allocation9 + $0x94] ss:$12 sps:$4 sm:$0xff]   ;;  %v1012_v45 = vld [vmem:[#allocation9 + $0x90] ss:$12 sps:$4 sm:$0xff]  }
  0x6a   :  { %291 = vmatpush1.bf16.msra.mxu0 %v973_v10  ;;  %v1022_v46 = vld [vmem:[#allocation9 + $0x68] ss:$12 sps:$4 sm:$0xff]   ;;  %v1018_v47 = vld [vmem:[#allocation9 + $0xac] ss:$12 sps:$4 sm:$0xff]   ;;  %v1025_v53 = vld [vmem:[#allocation9 + $0xb0] ss:$12 sps:$4 sm:$0xff]  }
  0x6b   :  { %292 = vmatprep.subr.bf16.mxu0 %v974_v11  ;;  %889 = vmatpush3.bf16.msra.mxu1 %v992_v17  ;;  %v1016_v48 = vld [vmem:[#allocation9 + $0xa8] ss:$12 sps:$4 sm:$0xff]   ;;  %v1361_v49 = vld [vmem:[#allocation6] sm:$0xff]  ;;  %v1023_v50 = vld [vmem:[#allocation9 + $0x80] ss:$12 sps:$4 sm:$0xff]   ;;  %v142_v4 = vshrl.u32 %v141_v3, 7 }
  0x6c   :  { %890 = vmatprep.subr.bf16.mxu1 %v1221_v0  ;;  %v365_v51 = vpack.c.bf16 %v1361_v49, %v1361_v49  ;;  %v1024_v52 = vld [vmem:[#allocation9 + $0x98] ss:$12 sps:$4 sm:$0xff]   ;;  %v1027_v55 = vld [vmem:[#allocation11 + $0x8] sm:$0xff]   ;;  %v1028_v56 = vld [vmem:[#allocation11 + $0x10] sm:$0xff]   ;;  %s1224_s29 = smov [#allocation13]  }
  0x6d   :  { %v1026_v54 = vld [vmem:[#allocation11] sm:$0xff]   ;;  %v1029_v57 = vld [vmem:[#allocation11 + $0x18] sm:$0xff]   ;;  %v1031_v59 = vld [vmem:[#allocation11 + $0x28] sm:$0xff]   ;;  %v143_v5 = vsub.s32 0, %v142_v4  ;;  %v147_v7 = vsub.s32 1, %v142_v4  ;;  %v151_v23 = vsub.s32 2, %v142_v4 }
  0x6e   :  { %293 = vmatpush1.bf16.msra.mxu0 %v976_v13  ;;  %v1030_v58 = vld [vmem:[#allocation11 + $0x20] sm:$0xff]   ;;  %v1032_v60 = vld [vmem:[#allocation11 + $0x30] sm:$0xff]   ;;  %v1033_v61 = vld [vmem:[#allocation11 + $0x38] sm:$0xff]   ;;  %s780_s30 = sshll.u32 %s1224_s29, 4  ;;  %s781_s30 = int_to_ptr.vmem [resolvable:$true] %s780_s30 }
  0x6f   :  { %294 = vmatprep.subr.bf16.mxu0 %v977_v15  ;;  %891 = vmatpush3.bf16.msra.mxu1 %v996_v20  ;;  %v139_v6 = vld [vmem:[%s1416_s4] sm:$0x7]  ;;  %s1158_s11 = scalar_lea.vmem %s781_s30, 128  ;;  %p1163_p13 = scmp.lt.s32.totalorder %s781_s30, %s781_s30 }
  0x70   :  { %892 = vmatprep.subr.bf16.mxu1 %v1221_v0  ;;  %v144_v8 = vrot.slane %v139_v6, %v143_v5  ;;  %v148_v10 = vrot.slane %v139_v6, %v147_v7  ;;  %p1159_p12 = scmp.ne.s32.totalorder %s781_s30, %s1158_s11  ;;  %p1164_p0 = scmp.lt.s32.totalorder %s1158_s11, %s1158_s11 }
  0x72   :  { %295 = vmatpush1.bf16.msra.mxu0 %v979_v16  ;;  %p1165_p1 = por %p1164_p0, %p1163_p13 }
  0x73   :  { %296 = vmatprep.subr.bf16.mxu0 %v980_v18  ;;  %893 = vmatpush3.bf16.msra.mxu1 %v1000_v24 }
  0x74   :  { %894 = vmatprep.subr.bf16.mxu1 %v1221_v0  ;;  %p1166_p2 = pnand %p1165_p1, %p1159_p12 }
  0x76   :  { %297 = vmatpush1.bf16.msra.mxu0 %v983_v19 }
  0x77   :  { %298 = vmatprep.subr.bf16.mxu0 %v984_v21  ;;  %895 = vmatpush3.bf16.msra.mxu1 %v1004_v28 }
  0x78   :  { %896 = vmatprep.subr.bf16.mxu1 %v1221_v0 }
  0x7a   :  { %299 = vmatpush1.bf16.msra.mxu0 %v987_v22 }
  0x7b   :  { %526 = vmatprep.subr.bf16.mxu0 %v991_v25  ;;  %897 = vmatpush3.bf16.msra.mxu1 %v1008_v31  ;;  %v845_v25 = vld [vmem:[%s1417_s5] ss:$0 sm:$0xff] }
  0x7c   :  { %902 = vmatprep.subr.bf16.mxu1 %v1221_v0 }
  0x7d   :  { %317 = vmatmul.mubr.bf16.vlgmr.msra.gmra.mrb[0].mxu0 %v106_v26 }
  0x7e   :  { %527 = vmatpush1.bf16.msra.mxu0 %v989_v27  ;;  %558 = vmatprep.mubr.bf16.mxu0 %v1222_v1 }
  0x7f   :  { %528 = vmatprep.subr.bf16.mxu0 %v995_v29  ;;  %899 = vmatmul.mubr.bf16.vlgmr.msra.gmra.mrb[0].mxu1 %v106_v26  ;;  %v152_v26 = vrot.slane %v139_v6, %v151_v23 }
  0x80   :  { %903 = vmatpush3.bf16.msra.mxu1 %v1015_v35  ;;  %918 = vmatprep.mubr.msk.bf16.mxu1 %vm1223_vm0, %v1221_v0 }
  0x81   :  { %904 = vmatprep.subr.bf16.mxu1 %v1221_v0 }
  0x82   :  { %529 = vmatpush1.bf16.msra.mxu0 %v993_v30 }
  0x83   :  { %530 = vmatprep.subr.bf16.mxu0 %v999_v32 }
  0x84   :  { %905 = vmatpush3.bf16.msra.mxu1 %v1019_v37 }
  0x85   :  { %906 = vmatprep.subr.bf16.mxu1 %v1221_v0 }
  0x86   :  { %531 = vmatpush1.bf16.msra.mxu0 %v997_v33 }
  0x87   :  { %532 = vmatprep.subr.bf16.mxu0 %v1003_v34 }
  0x88   :  { %907 = vmatpush3.bf16.msra.mxu1 %v1020_v40  ;;  %v846_v40 = vld [vmem:[%s1419_s7] ss:$0 sm:$0xff] }
  0x89   :  { %908 = vmatprep.subr.bf16.mxu1 %v1221_v0 }
  0x8a   :  { %533 = vmatpush1.bf16.msra.mxu0 %v1001_v36 }
  0x8b   :  { %534 = vmatprep.subr.bf16.mxu0 %v1007_v38 }
  0x8c   :  { %909 = vmatpush3.bf16.msra.mxu1 %v1021_v43 }
  0x8d   :  { %910 = vmatprep.subr.bf16.mxu1 %v1221_v0 }
  0x8e   :  { %535 = vmatpush1.bf16.msra.mxu0 %v1005_v39 }
  0x8f   :  { %536 = vmatprep.subr.bf16.mxu0 %v1011_v41 }
  0x90   :  { %911 = vmatpush3.bf16.msra.mxu1 %v1022_v46 }
  0x91   :  { %912 = vmatprep.subr.bf16.mxu1 %v1221_v0 }
  0x92   :  { %537 = vmatpush1.bf16.msra.mxu0 %v1009_v42 }
  0x93   :  { %538 = vmatprep.subr.bf16.mxu0 %v1014_v44 }
  0x94   :  { %913 = vmatpush3.bf16.msra.mxu1 %v1023_v50 }
  0x95   :  { %914 = vmatprep.subr.bf16.mxu1 %v1221_v0 }
  0x96   :  { %539 = vmatpush1.bf16.msra.mxu0 %v1012_v45 }
  0x97   :  { %540 = vmatprep.subr.bf16.mxu0 %v1018_v47 }
  0x98   :  { %915 = vmatpush3.bf16.msra.mxu1 %v1024_v52 }
  0x99   :  { %916 = vmatprep.subr.bf16.mxu1 %v1221_v0 }
  0x9a   :  { %541 = vmatpush1.bf16.msra.mxu0 %v1016_v48 }
  0x9b   :  { %922 = vmatprep.subr.bf16.mxu0 %v1221_v0 }
  0x9c   :  { %917 = vmatpush3.bf16.msra.mxu1 %v1025_v53 }
  0x9d   :  { %559 = vmatmul.mubr.bf16.vlgmr.msra.gmra.mrb[0].mxu0 %v365_v51 }
  0x9e   :  { %938 = vmatprep.mubr.msk.bf16.mxu0 %vm1223_vm0, %v1221_v0  ;;  %923 = vmatpush3.bf16.msra.mxu0 %v1026_v54 }
  0x9f   :  { %919 = vmatmul.mubr.bf16.vlgmr.msra.gmra.mrb[4].mxu1 %v365_v51  ;;  %924 = vmatprep.subr.bf16.mxu0 %v1221_v0 }
  0xa2   :  { %925 = vmatpush3.bf16.msra.mxu0 %v1027_v55 }
  0xa3   :  { %926 = vmatprep.subr.bf16.mxu0 %v1221_v0 }
  0xa6   :  { %927 = vmatpush3.bf16.msra.mxu0 %v1028_v56 }
  0xa7   :  { %928 = vmatprep.subr.bf16.mxu0 %v1221_v0 }
  0xaa   :  { %929 = vmatpush3.bf16.msra.mxu0 %v1029_v57 }
  0xab   :  { %930 = vmatprep.subr.bf16.mxu0 %v1221_v0 }
  0xae   :  { %931 = vmatpush3.bf16.msra.mxu0 %v1030_v58 }
  0xaf   :  { %932 = vmatprep.subr.bf16.mxu0 %v1221_v0 }
  0xb2   :  { %933 = vmatpush3.bf16.msra.mxu0 %v1031_v59 }
  0xb3   :  { %934 = vmatprep.subr.bf16.mxu0 %v1221_v0 }
  0xb6   :  { %935 = vmatpush3.bf16.msra.mxu0 %v1032_v60 }
  0xb7   :  { %936 = vmatprep.subr.bf16.mxu0 %v1221_v0 }
  0xba   :  { %937 = vmatpush3.bf16.msra.mxu0 %v1033_v61 }
 0x152   :  { %v359_v62 = vpop.f32.mrb[0].mxu1 }
 0x153   :  { %v900_v63 = vpop.f32.mrb[1].mxu1  ;;  %v360_v30 = vadd.f32 %v359_v62, %v152_v26 }
 0x154   :  { %v362_v1 = vpop.f32.mrb[2].mxu1 }
 0x155   :  { %v901_v2 = vpop.f32.mrb[3].mxu1 }
 0x170   :  { %v560_v9 = vpop.f32.mrb[0].mxu0 }
 0x171   :  { %v942_v11 = vadd.f32 %v560_v9, %v144_v8  ;;  %v562_v12 = vpop.f32.mrb[1].mxu0 }
 0x172   :  { %v564_v13 = vpop.f32.mrb[2].mxu0  ;;  %v943_v15 = vadd.f32 %v562_v12, %v148_v10  ;;  %v601_v17 = vpop.f32.mrb[4].mxu1 }
 0x173   :  { %v843_v0 = vmul.f32 -1.442695, %v942_v11  ;;  %v565_v14 = vpop.f32.mrb[3].mxu0  ;;  %v920_v18 = vpop.f32.mrb[5].mxu1  ;;  %v628_v28 = vadd.f32 %v845_v25, %v601_v17 }
 0x174   :  { %v844_v16 = vmul.f32 -1.442695, %v943_v15  ;;  %v604_v19 = vpop.f32.mrb[6].mxu1 }
 0x175   :  { %1034 = vpow2.f32 %v843_v0  ;;  %v921_v20 = vpop.f32.mrb[7].mxu1 }
 0x176   :  { %1036 = vpow2.f32 %v844_v16 }
 0x17f   :  { %v1035_v21 = vpop.eup %1034 }
 0x180   :  { %v615_v22 = vadd.f32 1.0, %v1035_v21  ;;  %v1037_v24 = vpop.eup %1036 }
 0x181   :  { %v616_v27 = vadd.f32 1.0, %v1037_v24 }
 0x182   :  { %1038 = vrcp.f32 %v615_v22 }
 0x183   :  { %1040 = vrcp.f32 %v616_v27 }
 0x18c   :  { %v1039_v29 = vpop.eup %1038 }
 0x18d   :  { %v629_v31 = vmul.f32 %v1039_v29, %v628_v28  ;;  %v1041_v33 = vpop.eup %1040 }
 0x18e   :  { %v632_v34 = vsub.f32 1.0, %v1041_v33  ;;  %v634_v37 = vmul.f32 %v1041_v33, %v1361_v49 }
 0x18f   :  { %v630_v32 = vadd.f32 %v629_v31, %v360_v30 }
 0x191   :  { %1042 = vtanh.f32 %v630_v32 }
 0x19b   :  { %v1043_v35 = vpop.eup %1042 }
 0x19c   :  { %v633_v36 = vmul.f32 %v1043_v35, %v632_v34 }
 0x19e   :  { %v635_v38 = vadd.f32 %v634_v37, %v633_v36 }
 0x1a0   :  { %v637_v39 = vpack.c.bf16 %v635_v38, %v635_v38  ;;  %763 = vst [vmem:[#allocation13] sm:$0xff] %v635_v38 }
 0x1a2   :  { %939 = vmatmul.mubr.bf16.vlgmr.msra.gmra.mrb[4].mxu0 %v637_v39 }
 0x275   :  { %v743_v41 = vpop.f32.mrb[4].mxu0 }
 0x276   :  { %v744_v42 = vadd.f32 %v846_v40, %v743_v41  ;;  %v940_v43 = vpop.f32.mrb[5].mxu0 }
 0x277   :  { %v746_v44 = vpop.f32.mrb[6].mxu0 }
 0x278   :  { %749 = vmax.xlane.f32.xlu0 %v744_v42  ;;  %v941_v45 = vpop.f32.mrb[7].mxu0 }
 0x305   :  { %v750_v46 = vpop.xlane.xlu0 %749 }
 0x306   :  { %v751_v47 = vsub.f32 %v744_v42, %v750_v46 }
 0x308   :  { %v752_v48 = vmul.f32 1.442695, %v751_v47 }
 0x30a   :  { %1044 = vpow2.f32 %v752_v48 }
 0x314   :  { %v1045_v50 = vpop.eup %1044 }
 0x315   :  { %754 = vadd.xlane.f32.xlu0 %v1045_v50 }
 0x316   :  { %1169 = shalt.err (!%p1166_p2)
}
 0x317   :  { %s1170_s13 = scalar_lea.hbm %s1421_s9, 128 }
 0x318   :  { %p1171_p3 = scmp.ne.s32.totalorder %s1421_s9, %s1170_s13  ;;  %p1174_p4 = scmp.lt.u32.totalorder %s1170_s13, %s1421_s9 }
 0x31a   :  { %p1176_p5 = pnand %p1174_p4, %p1171_p3 }
 0x31c   :  { %1179 = shalt.err (!%p1176_p5)
}
 0x31d   :  { %783 = dma.vmem_to_hbm [thread:$0]  %s781_s30, 128, %s1421_s9, [#allocation14]  }
 0x31e   :  { %s1225_s18 = smov [#allocation12]  }
 0x31f   :  { %s770_s19 = sshll.u32 %s1225_s18, 4  ;;  %s771_s19 = int_to_ptr.vmem [resolvable:$true] %s770_s19 }
 0x320   :  { %s1180_s20 = scalar_lea.vmem %s771_s19, 128  ;;  %p1185_p7 = scmp.lt.s32.totalorder %s771_s19, %s771_s19 }
 0x321   :  { %p1181_p6 = scmp.ne.s32.totalorder %s771_s19, %s1180_s20  ;;  %p1186_p8 = scmp.lt.s32.totalorder %s1180_s20, %s1180_s20 }
 0x323   :  { %p1187_p9 = por %p1186_p8, %p1185_p7 }
 0x325   :  { %p1188_p10 = pnand %p1187_p9, %p1181_p6 }
 0x3a2   :  { %v755_v49 = vpop.xlane.xlu0 %754 }
 0x3a3   :  { %1046 = vlog2.f32 %v755_v49 }
 0x3ad   :  { %v1047_v51 = vpop.eup %1046 }
 0x3ae   :  { %v757_v52 = vmul.f32 0.6931472, %v1047_v51 }
 0x3b0   :  { %v758_v53 = vsub.f32 %v751_v47, %v757_v52 }
 0x3b2   :  { %759 = vst [vmem:[#allocation12] sm:$0xff] %v758_v53 }
 0x3b3   :  { %1191 = shalt.err (!%p1188_p10)
}
 0x3b4   :  { %s1192_s9 = scalar_lea.hbm %s1420_s8, 128 }
 0x3b5   :  { %p1193_p11 = scmp.ne.s32.totalorder %s1420_s8, %s1192_s9  ;;  %p1196_p12 = scmp.lt.u32.totalorder %s1192_s9, %s1420_s8 }
 0x3b7   :  { %p1198_p13 = pnand %p1196_p12, %p1193_p11 }
 0x3b9   :  { %1201 = shalt.err (!%p1198_p13)
}
 0x3ba   :  { %773 = dma.vmem_to_hbm [thread:$0]  %s771_s19, 128, %s1420_s8, [#allocation5]  }
 0x3bb   :  { %1208 = dma.done.wait [#allocation5], 128  }
 0x3bc   :  { %1209 = vsyncadd [#allocation5], 4294967168 }
 0x3bd   :  { %1210 = dma.done.wait [#allocation14], 128  }
 0x3be   :  { %1211 = vsyncadd [#allocation14], 4294967168 }
 0x3bf   :  { %790 = vsyncpa [#allocation4], 1 }
 0x3c0   :  { %791 = vsyncpa [#allocation7], 1 }
 0x3c1   :  { %792 = vsyncpa [#allocation10], 1 }
 0x3c2   :  { %793 = vsyncpa [#allocation5], 1 }
 0x3c3   :  { %794 = vsyncpa [#allocation14], 1 }

</bundles_post_ra>
